<compile_context>
chip_gen: v7x
topology: tpu7x:2x2x1
jax: 0.10.0
libtpu: 0.0.40
codegen_flags: <defaults>
</compile_context>

<pallas_src>
import math

import jax
import jax.numpy as jnp
from jax.experimental import pallas as pl
from jax.experimental.pallas import tpu as pltpu

LANE = 128


def _round_up(n, m):
    return ((n + m - 1) // m) * m


def _ff_kernel(x_ref,
               w1_ref, b1_ref,
               w2_ref, b2_ref,
               w3_ref, b3_ref,
               w4_ref, b4_ref,
               o_ref):
    """Fused (Linear+BN+ReLU)x3 + Linear + Sigmoid for one batch tile.

    Weights are BN-folded and zero-padded to 128 lanes.  Matmuls run in bf16 on
    the MXU with f32 accumulation; bias add / ReLU / sigmoid stay in f32.  The
    final (H -> 1) projection is an elementwise multiply + lane reduction
    (VPU + XLU) so the MXU is free for the next tile's layer-1 matmul.
    """
    h = x_ref[...]                                              # (TB, F_in) bf16

    def hidden(h_bf16, w_ref, b_ref):
        z = jnp.dot(h_bf16, w_ref[...],
                    preferred_element_type=jnp.float32) + b_ref[...]
        return jnp.maximum(z, 0.0)                              # f32; Dropout = identity (eval)

    h1 = hidden(h, w1_ref, b1_ref)
    h2 = hidden(h1.astype(jnp.bfloat16), w2_ref, b2_ref)
    h3 = hidden(h2.astype(jnp.bfloat16), w3_ref, b3_ref)        # (TB, 128) f32

    # Final Linear(prev, 1) + Sigmoid: multiply + row-reduce, scalar bias from SMEM.
    z4 = jnp.sum(h3 * w4_ref[...], axis=-1, keepdims=True) + b4_ref[0]
    o_ref[...] = jax.nn.sigmoid(z4)


def init_params(key, input_size, hidden_sizes=(128, 64, 32), eps=1e-5):
    """PyTorch-default-style Linear init (uniform +-1/sqrt(fan_in)); BatchNorm1d
    at its initial state (gamma=1, beta=0, running_mean=0, running_var=1) is
    folded into each Linear (eval semantics).  Hidden widths are zero-padded to
    128 lanes; matmul weights are cast to bf16, biases stay f32."""
    assert len(hidden_sizes) == 3, "kernel is specialized to 3 hidden layers"
    params = []
    prev_true, prev_pad = input_size, input_size        # layer-1 input stays unpadded
    for h in hidden_sizes:
        key, kw, kb = jax.random.split(key, 3)
        bound = 1.0 / math.sqrt(prev_true)
        w = jax.random.uniform(kw, (prev_true, h), jnp.float32, -bound, bound)
        b = jax.random.uniform(kb, (h,), jnp.float32, -bound, bound)
        # BatchNorm fold (eval): scale = gamma/sqrt(var+eps), shift = beta - mean*scale
        scale = jnp.ones((h,), jnp.float32) / jnp.sqrt(jnp.ones((h,), jnp.float32) + eps)
        shift = jnp.zeros((h,), jnp.float32)
        w_f = w * scale[None, :]
        b_f = b * scale + shift
        h_pad = _round_up(h, LANE)
        w_p = jnp.zeros((prev_pad, h_pad), jnp.float32).at[:prev_true, :h].set(w_f)
        b_p = jnp.zeros((1, h_pad), jnp.float32).at[:, :h].set(b_f)
        params.extend([w_p.astype(jnp.bfloat16), b_p])
        prev_true, prev_pad = h, h_pad
    # Final Linear(prev, 1) -> stored as a padded (1, prev_pad) row + scalar bias.
    key, kw, kb = jax.random.split(key, 3)
    bound = 1.0 / math.sqrt(prev_true)
    w4 = jax.random.uniform(kw, (prev_true, 1), jnp.float32, -bound, bound)
    b4 = jax.random.uniform(kb, (1,), jnp.float32, -bound, bound)
    w4_row = jnp.zeros((1, prev_pad), jnp.float32).at[0, :prev_true].set(w4[:, 0])
    params.extend([w4_row, b4])
    return params


def feedforward(x, params, tile_b=256):
    w1, b1, w2, b2, w3, b3, w4, b4 = params
    B, f_in = x.shape

    # Batch tile: multiple of 8 sublanes, capped at tile_b; pad batch so the
    # grid has only full tiles (padded rows are discarded at the end).
    tb = min(tile_b, _round_up(B, 8))
    b_pad = _round_up(B, tb)
    xb = x.astype(jnp.bfloat16)
    if b_pad != B:
        xb = jnp.pad(xb, ((0, b_pad - B), (0, 0)))
    grid = (b_pad // tb,)

    def resident(arr):
        # full-array block, constant index_map -> stays VMEM-resident across steps
        return pl.BlockSpec(arr.shape, lambda i: (0, 0))

    flops = 2 * b_pad * (f_in * w1.shape[1]
                         + w2.shape[0] * w2.shape[1]
                         + w3.shape[0] * w3.shape[1]
                         + w4.shape[1])
    bytes_accessed = int(xb.size * 2 + b_pad * 4
                         + sum(int(p.size) * p.dtype.itemsize for p in params))

    out = pl.pallas_call(
        _ff_kernel,
        out_shape=jax.ShapeDtypeStruct((b_pad, 1), jnp.float32),
        grid=grid,
        in_specs=[
            pl.BlockSpec((tb, f_in), lambda i: (i, 0)),            # x tile (pipelined)
            resident(w1), resident(b1),
            resident(w2), resident(b2),
            resident(w3), resident(b3),
            resident(w4),
            pl.BlockSpec(memory_space=pltpu.MemorySpace.SMEM),     # scalar b4
        ],
        out_specs=pl.BlockSpec((tb, 1), lambda i: (i, 0)),
        compiler_params=pltpu.CompilerParams(
            dimension_semantics=("parallel",)),
        cost_estimate=pl.CostEstimate(
            flops=flops,
            transcendentals=b_pad,
            bytes_accessed=bytes_accessed),
    )(xb, w1, b1, w2, b2, w3, b3, w4, b4)
    return out[:B]


if __name__ == "__main__":
    key = jax.random.PRNGKey(0)
    k_x, k_p = jax.random.split(key)

    batch, input_size = 8, 32
    x = jax.random.normal(k_x, (batch, input_size), dtype=jnp.float32)
    params = init_params(k_p, input_size, hidden_sizes=(128, 64, 32))

    out = feedforward(x, params)
    out = jax.block_until_ready(out)
    assert out.shape == (batch, 1)
    assert bool(jnp.all((out >= 0.0) & (out <= 1.0)))
    print("KERNEL_OK")
</pallas_src>

<mosaic_0001>
module attributes {stable_mosaic.version = 11 : i64} {
  func.func @_ff_kernel(%arg0: i32, %arg1: memref<8x32xbf16, #tpu.memory_space<vmem>>, %arg2: memref<32x128xbf16, #tpu.memory_space<vmem>>, %arg3: memref<1x128xf32, #tpu.memory_space<vmem>>, %arg4: memref<128x128xbf16, #tpu.memory_space<vmem>>, %arg5: memref<1x128xf32, #tpu.memory_space<vmem>>, %arg6: memref<128x128xbf16, #tpu.memory_space<vmem>>, %arg7: memref<1x128xf32, #tpu.memory_space<vmem>>, %arg8: memref<1x128xf32, #tpu.memory_space<vmem>>, %arg9: memref<1xf32, #tpu.memory_space<smem>>, %arg10: memref<8x1xf32, #tpu.memory_space<vmem>>) attributes {dimension_semantics = [#tpu.dimension_semantics<parallel>], iteration_bounds = array<i64: 1>, scalar_prefetch = 0 : i64, scratch_operands = 0 : i64, tpu.core_type = #tpu.core_type<tc>, window_params = [{transform_indices = @transform_0, window_bounds = array<i64: 8, 32>}, {pipeline_mode = #tpu.pipeline_mode<synchronous>, transform_indices = @transform_1, window_bounds = array<i64: 32, 128>}, {pipeline_mode = #tpu.pipeline_mode<synchronous>, transform_indices = @transform_2, window_bounds = array<i64: 1, 128>}, {pipeline_mode = #tpu.pipeline_mode<synchronous>, transform_indices = @transform_3, window_bounds = array<i64: 128, 128>}, {pipeline_mode = #tpu.pipeline_mode<synchronous>, transform_indices = @transform_4, window_bounds = array<i64: 1, 128>}, {pipeline_mode = #tpu.pipeline_mode<synchronous>, transform_indices = @transform_5, window_bounds = array<i64: 128, 128>}, {pipeline_mode = #tpu.pipeline_mode<synchronous>, transform_indices = @transform_6, window_bounds = array<i64: 1, 128>}, {pipeline_mode = #tpu.pipeline_mode<synchronous>, transform_indices = @transform_7, window_bounds = array<i64: 1, 128>}, {transform_indices = @transform_8, window_bounds = array<i64: 1>}, {transform_indices = @transform_9, window_bounds = array<i64: 8, 1>}]} {
    %c0 = arith.constant 0 : index
    %c0_0 = arith.constant 0 : index
    %0 = vector.load %arg1[%c0, %c0_0] : memref<8x32xbf16, #tpu.memory_space<vmem>>, vector<8x32xbf16>
    %c0_1 = arith.constant 0 : index
    %c0_2 = arith.constant 0 : index
    %1 = vector.load %arg2[%c0_1, %c0_2] : memref<32x128xbf16, #tpu.memory_space<vmem>>, vector<32x128xbf16>
    %cst = arith.constant dense<0.000000e+00> : vector<8x128xf32>
    %2 = tpu.matmul %0, %1, %cst {dimension_numbers = #tpu.dot_dimension_numbers<[1], [0], [0], [1], [0, 0, 1, 1], [], []>} : vector<8x32xbf16>, vector<32x128xbf16>, vector<8x128xf32> -> vector<8x128xf32>
    %c0_3 = arith.constant 0 : index
    %c0_4 = arith.constant 0 : index
    %3 = vector.load %arg3[%c0_3, %c0_4] : memref<1x128xf32, #tpu.memory_space<vmem>>, vector<1x128xf32>
    %4 = vector.broadcast %3 : vector<1x128xf32> to vector<8x128xf32>
    %5 = arith.addf %2, %4 : vector<8x128xf32>
    %cst_5 = arith.constant 0.000000e+00 : f32
    %6 = vector.broadcast %cst_5 : f32 to vector<8x128xf32>
    %7 = arith.maximumf %5, %6 : vector<8x128xf32>
    %8 = arith.truncf %7 : vector<8x128xf32> to vector<8x128xbf16>
    %c0_6 = arith.constant 0 : index
    %c0_7 = arith.constant 0 : index
    %9 = vector.load %arg4[%c0_6, %c0_7] : memref<128x128xbf16, #tpu.memory_space<vmem>>, vector<128x128xbf16>
    %cst_8 = arith.constant dense<0.000000e+00> : vector<8x128xf32>
    %10 = tpu.matmul %8, %9, %cst_8 {dimension_numbers = #tpu.dot_dimension_numbers<[1], [0], [0], [1], [0, 0, 1, 1], [], []>} : vector<8x128xbf16>, vector<128x128xbf16>, vector<8x128xf32> -> vector<8x128xf32>
    %c0_9 = arith.constant 0 : index
    %c0_10 = arith.constant 0 : index
    %11 = vector.load %arg5[%c0_9, %c0_10] : memref<1x128xf32, #tpu.memory_space<vmem>>, vector<1x128xf32>
    %12 = vector.broadcast %11 : vector<1x128xf32> to vector<8x128xf32>
    %13 = arith.addf %10, %12 : vector<8x128xf32>
    %cst_11 = arith.constant 0.000000e+00 : f32
    %14 = vector.broadcast %cst_11 : f32 to vector<8x128xf32>
    %15 = arith.maximumf %13, %14 : vector<8x128xf32>
    %16 = arith.truncf %15 : vector<8x128xf32> to vector<8x128xbf16>
    %c0_12 = arith.constant 0 : index
    %c0_13 = arith.constant 0 : index
    %17 = vector.load %arg6[%c0_12, %c0_13] : memref<128x128xbf16, #tpu.memory_space<vmem>>, vector<128x128xbf16>
    %cst_14 = arith.constant dense<0.000000e+00> : vector<8x128xf32>
    %18 = tpu.matmul %16, %17, %cst_14 {dimension_numbers = #tpu.dot_dimension_numbers<[1], [0], [0], [1], [0, 0, 1, 1], [], []>} : vector<8x128xbf16>, vector<128x128xbf16>, vector<8x128xf32> -> vector<8x128xf32>
    %c0_15 = arith.constant 0 : index
    %c0_16 = arith.constant 0 : index
    %19 = vector.load %arg7[%c0_15, %c0_16] : memref<1x128xf32, #tpu.memory_space<vmem>>, vector<1x128xf32>
    %20 = vector.broadcast %19 : vector<1x128xf32> to vector<8x128xf32>
    %21 = arith.addf %18, %20 : vector<8x128xf32>
    %cst_17 = arith.constant 0.000000e+00 : f32
    %22 = vector.broadcast %cst_17 : f32 to vector<8x128xf32>
    %23 = arith.maximumf %21, %22 : vector<8x128xf32>
    %c0_18 = arith.constant 0 : index
    %c0_19 = arith.constant 0 : index
    %24 = vector.load %arg8[%c0_18, %c0_19] : memref<1x128xf32, #tpu.memory_space<vmem>>, vector<1x128xf32>
    %25 = vector.broadcast %24 : vector<1x128xf32> to vector<8x128xf32>
    %26 = arith.mulf %23, %25 : vector<8x128xf32>
    %cst_20 = arith.constant dense<0.000000e+00> : vector<8xf32>
    %27 = vector.multi_reduction <add>, %26, %cst_20 [1] : vector<8x128xf32> to vector<8xf32>
    %28 = vector.shape_cast %27 : vector<8xf32> to vector<8x1xf32>
    %c0_21 = arith.constant 0 : index
    %29 = memref.load %arg9[%c0_21] : memref<1xf32, #tpu.memory_space<smem>>
    %30 = vector.broadcast %29 : f32 to vector<8x1xf32>
    %31 = arith.addf %28, %30 : vector<8x1xf32>
    %32 = arith.negf %31 : vector<8x1xf32>
    %33 = math.exp %32 : vector<8x1xf32>
    %cst_22 = arith.constant 1.000000e+00 : f32
    %34 = vector.broadcast %cst_22 : f32 to vector<8x1xf32>
    %35 = arith.addf %34, %33 : vector<8x1xf32>
    %36 = arith.divf %34, %35 : vector<8x1xf32>
    %c0_23 = arith.constant 0 : index
    %c0_24 = arith.constant 0 : index
    %37 = vector.load %arg10[%c0_23, %c0_24] : memref<8x1xf32, #tpu.memory_space<vmem>>, vector<8x1xf32>
    tpu.vector_store %arg10[%c0_23, %c0_24], %36 {strides = array<i32>} : memref<8x1xf32, #tpu.memory_space<vmem>>, vector<8x1xf32>,
    return
  }
  func.func @transform_0(%arg0: i32) -> (i32, i32) {
    %c0_i32 = arith.constant 0 : i32
    %c0_i32_0 = arith.constant 0 : i32
    return %arg0, %c0_i32 : i32, i32
  }
  func.func @transform_1(%arg0: i32) -> (i32, i32) {
    %c0_i32 = arith.constant 0 : i32
    %c0_i32_0 = arith.constant 0 : i32
    %c0_i32_1 = arith.constant 0 : i32
    return %c0_i32, %c0_i32_0 : i32, i32
  }
  func.func @transform_2(%arg0: i32) -> (i32, i32) {
    %c0_i32 = arith.constant 0 : i32
    %c0_i32_0 = arith.constant 0 : i32
    %c0_i32_1 = arith.constant 0 : i32
    return %c0_i32, %c0_i32_0 : i32, i32
  }
  func.func @transform_3(%arg0: i32) -> (i32, i32) {
    %c0_i32 = arith.constant 0 : i32
    %c0_i32_0 = arith.constant 0 : i32
    %c0_i32_1 = arith.constant 0 : i32
    return %c0_i32, %c0_i32_0 : i32, i32
  }
  func.func @transform_4(%arg0: i32) -> (i32, i32) {
    %c0_i32 = arith.constant 0 : i32
    %c0_i32_0 = arith.constant 0 : i32
    %c0_i32_1 = arith.constant 0 : i32
    return %c0_i32, %c0_i32_0 : i32, i32
  }
  func.func @transform_5(%arg0: i32) -> (i32, i32) {
    %c0_i32 = arith.constant 0 : i32
    %c0_i32_0 = arith.constant 0 : i32
    %c0_i32_1 = arith.constant 0 : i32
    return %c0_i32, %c0_i32_0 : i32, i32
  }
  func.func @transform_6(%arg0: i32) -> (i32, i32) {
    %c0_i32 = arith.constant 0 : i32
    %c0_i32_0 = arith.constant 0 : i32
    %c0_i32_1 = arith.constant 0 : i32
    return %c0_i32, %c0_i32_0 : i32, i32
  }
  func.func @transform_7(%arg0: i32) -> (i32, i32) {
    %c0_i32 = arith.constant 0 : i32
    %c0_i32_0 = arith.constant 0 : i32
    %c0_i32_1 = arith.constant 0 : i32
    return %c0_i32, %c0_i32_0 : i32, i32
  }
  func.func @transform_8(%arg0: i32) -> i32 {
    %c0_i32 = arith.constant 0 : i32
    %c0_i32_0 = arith.constant 0 : i32
    return %c0_i32 : i32
  }
  func.func @transform_9(%arg0: i32) -> (i32, i32) {
    %c0_i32 = arith.constant 0 : i32
    %c0_i32_0 = arith.constant 0 : i32
    return %arg0, %c0_i32 : i32, i32
  }
}

</mosaic_0001>

<bundles_post_ra>
// kernel: tpu_custom_call.1
= control target key start
LH: loop header
LB: loop body
LE: loop exit
PB: predicated region body
PF: predicated region fallthrough
CT: control target
= control target key end

     0   :  { %15 = vsyncpa [#allocation4], 0  ;;  %s784_s0 = inlined_call_operand.hbm [shape: bf16[8,32], index: 0, kind: input, shape index: {}]   ;;  %s785_s1 = inlined_call_operand.hbm [shape: bf16[32,128], index: 1, kind: input, shape index: {}]   ;;  %s786_s2 = inlined_call_operand.vmem [shape: f32[1,128], index: 2, kind: input, shape index: {}]   ;;  %s787_s3 = inlined_call_operand.hbm [shape: bf16[128,128], index: 3, kind: input, shape index: {}]   ;;  %s788_s4 = inlined_call_operand.vmem [shape: f32[1,128], index: 4, kind: input, shape index: {}]   ;;  %s789_s5 = inlined_call_operand.hbm [shape: bf16[128,128], index: 5, kind: input, shape index: {}]   ;;  %s790_s6 = inlined_call_operand.vmem [shape: f32[1,128], index: 6, kind: input, shape index: {}]   ;;  %s791_s7 = inlined_call_operand.vmem [shape: f32[1,128], index: 7, kind: input, shape index: {}]   ;;  %s792_s8 = inlined_call_operand.<no memory space> [shape: f32[1], index: 8, kind: input, shape index: {}]   ;;  %s793_s9 = inlined_call_operand.vmem [shape: f32[8,1], index: 9, kind: output, shape index: {}]  }
   0x1   :  { %16 = vsyncpa [#allocation6], 0 }
   0x2   :  { %17 = vsyncpa [#allocation9], 0  ;;  %s627_s30 = smov [#allocation5]   ;;  %s533_s13 = scalar_lea.hbm %s785_s1, 256 }
   0x3   :  { %s33_s10 = sshll.u32 %s627_s30, 4  ;;  %p534_p0 = scmp.ne.s32.totalorder %s785_s1, %s533_s13  ;;  %s34_s10 = int_to_ptr.vmem [resolvable:$true] %s33_s10 }
   0x4   :  { %p537_p1 = scmp.lt.u32.totalorder %s533_s13, %s785_s1 }
   0x6   :  { %p539_p2 = pnand %p537_p1, %p534_p0 }
   0x8   :  { %542 = shalt.err (!%p539_p2)
}
   0x9   :  { %s543_s18 = scalar_lea.vmem %s34_s10, 256  ;;  %p548_p4 = scmp.lt.s32.totalorder %s34_s10, %s34_s10 }
   0xa   :  { %p544_p3 = scmp.ne.s32.totalorder %s34_s10, %s543_s18  ;;  %p549_p5 = scmp.lt.s32.totalorder %s543_s18, %s543_s18 }
   0xc   :  { %p550_p6 = por %p549_p5, %p548_p4 }
   0xe   :  { %p551_p7 = pnand %p550_p6, %p544_p3 }
  0x10   :  { %554 = shalt.err (!%p551_p7)
}
  0x11   :  { %s628_s19 = smov 64   ;;  %s629_s20 = smov 4  }
  0x12   :  { %39 = dma.hbm_to_vmem [thread:$0]  %s785_s1, 256, %s34_s10, [#allocation6], %s628_s19, %s628_s19, %s629_s20  }
  0x13   :  { %s630_s23 = smov [#allocation3]   ;;  %s631_s25 = smov [#allocation7]  }
  0x14   :  { %s24_s24 = sshll.u32 %s630_s23, 4  ;;  %s47_s26 = sshll.u32 %s631_s25, 4  ;;  %s25_s24 = int_to_ptr.vmem [resolvable:$true] %s24_s24  ;;  %s48_s26 = int_to_ptr.vmem [resolvable:$true] %s47_s26 }
  0x15   :  { %s555_s29 = scalar_lea.hbm %s784_s0, 64 }
  0x16   :  { %p556_p8 = scmp.ne.s32.totalorder %s784_s0, %s555_s29  ;;  %p559_p9 = scmp.lt.u32.totalorder %s555_s29, %s784_s0 }
  0x18   :  { %p561_p10 = pnand %p559_p9, %p556_p8 }
  0x1a   :  { %564 = shalt.err (!%p561_p10)
}
  0x1b   :  { %s565_s1 = scalar_lea.vmem %s25_s24, 64  ;;  %p570_p12 = scmp.lt.s32.totalorder %s25_s24, %s25_s24 }
  0x1c   :  { %p566_p11 = scmp.ne.s32.totalorder %s25_s24, %s565_s1  ;;  %p571_p13 = scmp.lt.s32.totalorder %s565_s1, %s565_s1 }
  0x1e   :  { %p572_p0 = por %p571_p13, %p570_p12 }
  0x20   :  { %p573_p1 = pnand %p572_p0, %p566_p11 }
  0x22   :  { %576 = shalt.err (!%p573_p1)
}
  0x23   :  { %27 = dma.hbm_to_vmem [thread:$0]  %s784_s0, 64, %s25_s24, [#allocation4]  }
  0x24   :  { %s577_s17 = scalar_lea.hbm %s787_s3, 1024 }
  0x25   :  { %p578_p2 = scmp.ne.s32.totalorder %s787_s3, %s577_s17  ;;  %p581_p3 = scmp.lt.u32.totalorder %s577_s17, %s787_s3 }
  0x27   :  { %p583_p4 = pnand %p581_p3, %p578_p2 }
  0x29   :  { %586 = shalt.err (!%p583_p4)
}
  0x2a   :  { %s587_s25 = scalar_lea.vmem %s48_s26, 1024  ;;  %p592_p6 = scmp.lt.s32.totalorder %s48_s26, %s48_s26 }
  0x2b   :  { %p588_p5 = scmp.ne.s32.totalorder %s48_s26, %s587_s25  ;;  %p593_p7 = scmp.lt.s32.totalorder %s587_s25, %s587_s25 }
  0x2d   :  { %p594_p8 = por %p593_p7, %p592_p6 }
  0x2f   :  { %p595_p9 = pnand %p594_p8, %p588_p5 }
  0x31   :  { %598 = shalt.err (!%p595_p9)
}
  0x32   :  { %53 = dma.hbm_to_vmem [thread:$0]  %s787_s3, 1024, %s48_s26, [#allocation6], %s628_s19, %s628_s19, %s629_s20  }
  0x33   :  { %s632_s27 = smov [#allocation8]   ;;  %s599_s11 = scalar_lea.hbm %s789_s5, 1024 }
  0x34   :  { %s61_s28 = sshll.u32 %s632_s27, 4  ;;  %p600_p10 = scmp.ne.s32.totalorder %s789_s5, %s599_s11  ;;  %s62_s28 = int_to_ptr.vmem [resolvable:$true] %s61_s28 }
  0x35   :  { %p603_p11 = scmp.lt.u32.totalorder %s599_s11, %s789_s5 }
  0x37   :  { %p605_p12 = pnand %p603_p11, %p600_p10 }
  0x39   :  { %608 = shalt.err (!%p605_p12)
}
  0x3a   :  { %s609_s14 = scalar_lea.vmem %s62_s28, 1024  ;;  %p614_p0 = scmp.lt.s32.totalorder %s62_s28, %s62_s28 }
  0x3b   :  { %p610_p13 = scmp.ne.s32.totalorder %s62_s28, %s609_s14  ;;  %p615_p1 = scmp.lt.s32.totalorder %s609_s14, %s609_s14 }
  0x3d   :  { %p616_p2 = por %p615_p1, %p614_p0 }
  0x3f   :  { %p617_p3 = pnand %p616_p2, %p610_p13 }
  0x41   :  { %620 = shalt.err (!%p617_p3)
}
  0x42   :  { %67 = dma.hbm_to_vmem [thread:$0]  %s789_s5, 1024, %s62_s28, [#allocation9], %s628_s19, %s628_s19, %s629_s20  }
  0x43   :  { %621 = dma.done.wait [#allocation4], 64  }
  0x44   :  { %622 = vsyncadd [#allocation4], 4294967232 }
  0x45   :  { %623 = dma.done.wait [#allocation6], 1280  }
  0x46   :  { %624 = vsyncadd [#allocation6], 4294966016 }
  0x47   :  { %625 = dma.done.wait [#allocation9], 1024  }
  0x48   :  { %626 = vsyncadd [#allocation9], 4294966272  ;;  %v633_v0 = vmov 0.0   ;;  %vm634_vm0 = vmmov 0   ;;  %v511_v1 = vld [vmem:[#allocation5] sm:$0xff]   ;;  %v512_v2 = vld [vmem:[#allocation5 + $0x8] sm:$0xff]   ;;  %v393_v45 = vstv %s792_s8 }
  0x49   :  { %455 = vmatprep.subr.bf16.mxu0 %v633_v0  ;;  %459 = vmatprep.mubr.msk.bf16.mxu0 %vm634_vm0, %v633_v0  ;;  %v513_v3 = vld [vmem:[#allocation7] sm:$0xff]   ;;  %vm111_vm1 = vcmask 261120   ;;  %v514_v4 = vld [vmem:[#allocation7 + $0x8] sm:$0xff]   ;;  %v515_v6 = vld [vmem:[#allocation7 + $0x10] sm:$0xff]   ;;  %vm401_vm2 = vcmask 7168  }
  0x4a   :  { %463 = vmatprep.subr.bf16.mxu1 %v633_v0  ;;  %479 = vmatprep.mubr.msk.bf16.mxu1 %vm634_vm0, %v633_v0  ;;  %v87_v5 = vld [vmem:[#allocation3] sm:$0xf]  ;;  %v516_v7 = vld [vmem:[#allocation7 + $0x18] sm:$0xff]   ;;  %v517_v8 = vld [vmem:[#allocation7 + $0x20] sm:$0xff]  }
  0x4b   :  { %456 = vmatpush3.bf16.msra.mxu0 %v511_v1  ;;  %464 = vmatpush3.bf16.msra.mxu1 %v513_v3  ;;  %v518_v9 = vld [vmem:[#allocation7 + $0x28] sm:$0xff]   ;;  %v519_v10 = vld [vmem:[#allocation7 + $0x30] sm:$0xff]   ;;  %v520_v11 = vld [vmem:[#allocation7 + $0x38] sm:$0xff]  }
  0x4c   :  { %457 = vmatprep.subr.bf16.mxu0 %v633_v0  ;;  %465 = vmatprep.subr.bf16.mxu1 %v633_v0  ;;  %v521_v12 = vld [vmem:[#allocation8] sm:$0xff]   ;;  %v522_v13 = vld [vmem:[#allocation8 + $0x8] sm:$0xff]   ;;  %v523_v14 = vld [vmem:[#allocation8 + $0x10] sm:$0xff]  }
  0x4d   :  { %v524_v15 = vld [vmem:[#allocation8 + $0x18] sm:$0xff]   ;;  %v525_v16 = vld [vmem:[#allocation8 + $0x20] sm:$0xff]   ;;  %v526_v17 = vld [vmem:[#allocation8 + $0x28] sm:$0xff]  }
  0x4e   :  { %v410_v18 = vld [vmem:[%s786_s2] ss:$0 sm:$0xff]  ;;  %v527_v26 = vld [vmem:[#allocation8 + $0x30] sm:$0xff]   ;;  %v528_v27 = vld [vmem:[#allocation8 + $0x38] sm:$0xff]  }
  0x4f   :  { %458 = vmatpush3.bf16.msra.mxu0 %v512_v2  ;;  %466 = vmatpush3.bf16.msra.mxu1 %v514_v4  ;;  %v414_v28 = vld [vmem:[%s788_s4] ss:$0 sm:$0xff] }
  0x50   :  { %483 = vmatprep.subr.bf16.mxu0 %v633_v0  ;;  %467 = vmatprep.subr.bf16.mxu1 %v633_v0  ;;  %v423_v36 = vld [vmem:[%s790_s6] ss:$0 sm:$0xff] }
  0x51   :  { %v432_v41 = vld [vmem:[%s791_s7] ss:$0 sm:$0xff] }
  0x52   :  { %460 = vmatmul.mubr.msk.bf16.vlgmr.msra.gmra.mrb[0].mxu0 %vm111_vm1, %v87_v5 }
  0x53   :  { %499 = vmatprep.mubr.msk.bf16.mxu0 %vm634_vm0, %v633_v0  ;;  %468 = vmatpush3.bf16.msra.mxu1 %v515_v6 }
  0x54   :  { %469 = vmatprep.subr.bf16.mxu1 %v633_v0  ;;  %484 = vmatpush3.bf16.msra.mxu0 %v521_v12 }
  0x55   :  { %485 = vmatprep.subr.bf16.mxu0 %v633_v0 }
  0x57   :  { %470 = vmatpush3.bf16.msra.mxu1 %v516_v7 }
  0x58   :  { %471 = vmatprep.subr.bf16.mxu1 %v633_v0  ;;  %486 = vmatpush3.bf16.msra.mxu0 %v522_v13 }
  0x59   :  { %487 = vmatprep.subr.bf16.mxu0 %v633_v0 }
  0x5b   :  { %472 = vmatpush3.bf16.msra.mxu1 %v517_v8 }
  0x5c   :  { %473 = vmatprep.subr.bf16.mxu1 %v633_v0  ;;  %488 = vmatpush3.bf16.msra.mxu0 %v523_v14 }
  0x5d   :  { %489 = vmatprep.subr.bf16.mxu0 %v633_v0 }
  0x5f   :  { %474 = vmatpush3.bf16.msra.mxu1 %v518_v9 }
  0x60   :  { %475 = vmatprep.subr.bf16.mxu1 %v633_v0  ;;  %490 = vmatpush3.bf16.msra.mxu0 %v524_v15 }
  0x61   :  { %491 = vmatprep.subr.bf16.mxu0 %v633_v0 }
  0x63   :  { %476 = vmatpush3.bf16.msra.mxu1 %v519_v10 }
  0x64   :  { %477 = vmatprep.subr.bf16.mxu1 %v633_v0  ;;  %492 = vmatpush3.bf16.msra.mxu0 %v525_v16 }
  0x65   :  { %493 = vmatprep.subr.bf16.mxu0 %v633_v0 }
  0x67   :  { %478 = vmatpush3.bf16.msra.mxu1 %v520_v11 }
  0x68   :  { %494 = vmatpush3.bf16.msra.mxu0 %v526_v17 }
  0x69   :  { %495 = vmatprep.subr.bf16.mxu0 %v633_v0 }
  0x6c   :  { %496 = vmatpush3.bf16.msra.mxu0 %v527_v26 }
  0x6d   :  { %497 = vmatprep.subr.bf16.mxu0 %v633_v0 }
  0x70   :  { %498 = vmatpush3.bf16.msra.mxu0 %v528_v27 }
 0x125   :  { %v149_v19 = vpop.f32.mrb[0].mxu0 }
 0x126   :  { %v150_v20 = vadd.f32 %v410_v18, %v149_v19  ;;  %v461_v21 = vpop.f32.mrb[1].mxu0 }
 0x127   :  { %v152_v22 = vpop.f32.mrb[2].mxu0 }
 0x128   :  { %v155_v23 = vmax.f32 %v150_v20, 0.0  ;;  %v462_v24 = vpop.f32.mrb[3].mxu0 }
 0x12a   :  { %v156_v25 = vpack.c.bf16 %v155_v23, %v155_v23 }
 0x12c   :  { %480 = vmatmul.mubr.bf16.vlgmr.msra.gmra.mrb[0].mxu1 %v156_v25 }
 0x1ff   :  { %v262_v29 = vpop.f32.mrb[0].mxu1 }
 0x200   :  { %v263_v30 = vadd.f32 %v414_v28, %v262_v29  ;;  %v481_v31 = vpop.f32.mrb[1].mxu1 }
 0x201   :  { %v265_v32 = vpop.f32.mrb[2].mxu1 }
 0x202   :  { %v268_v33 = vmax.f32 %v263_v30, 0.0  ;;  %v482_v34 = vpop.f32.mrb[3].mxu1 }
 0x204   :  { %v269_v35 = vpack.c.bf16 %v268_v33, %v268_v33 }
 0x206   :  { %500 = vmatmul.mubr.bf16.vlgmr.msra.gmra.mrb[4].mxu0 %v269_v35 }
 0x2d9   :  { %v375_v37 = vpop.f32.mrb[4].mxu0 }
 0x2da   :  { %v376_v38 = vadd.f32 %v423_v36, %v375_v37  ;;  %v501_v39 = vpop.f32.mrb[5].mxu0 }
 0x2db   :  { %v378_v40 = vpop.f32.mrb[6].mxu0 }
 0x2dc   :  { %v381_v42 = vmax.f32 %v376_v38, 0.0  ;;  %v502_v43 = vpop.f32.mrb[7].mxu0 }
 0x2de   :  { %v389_v44 = vmul.f32 %v432_v41, %v381_v42 }
 0x2e0   :  { %390 = vadd.xlane.f32.xlu0 %v389_v44 }
 0x36d   :  { %v391_v46 = vpop.xlane.xlu0 %390 }
 0x36e   :  { %v394_v47 = vadd.f32 %v393_v45, %v391_v46 }
 0x370   :  { %v433_v48 = vmul.f32 -1.442695, %v394_v47 }
 0x372   :  { %529 = vpow2.f32 %v433_v48 }
 0x37c   :  { %v530_v49 = vpop.eup %529 }
 0x37d   :  { %v398_v50 = vadd.f32 1.0, %v530_v49 }
 0x37f   :  { %531 = vrcp.f32 %v398_v50 }
 0x389   :  { %v532_v51 = vpop.eup %531 }
 0x38a   :  { %402 = vst.msk [vmem:[%s793_s9] sm:$0xff] %vm401_vm2, %v532_v51 }
 0x38b   :  { %407 = vsyncpa [#allocation4], 1 }
 0x38c   :  { %408 = vsyncpa [#allocation6], 1 }
 0x38d   :  { %409 = vsyncpa [#allocation9], 1 }

</bundles_post_ra>
